<compile_context>
chip_gen: v6e
topology: v6e:2x2x1
jax: 0.10.0
libtpu: 0.0.40
codegen_flags: <defaults>
</compile_context>

<pallas_src>
import jax
import jax.numpy as jnp
import numpy as np
from jax.experimental import pallas as pl
from jax.experimental.pallas import tpu as pltpu


def _norm_loss_kernel(o_ref, t_ref, out_ref):
    # o_ref / t_ref: (TB, C, TILE_HW) block; out_ref: (TB, TILE_HW) block.
    d = o_ref[...].astype(jnp.float32) - t_ref[...].astype(jnp.float32)
    out_ref[...] = jnp.sqrt(jnp.sum(d * d, axis=1))


def _round_up(x, m):
    return (x + m - 1) // m * m


def _pick_hw_tile(hw, target_lanes):
    """Largest divisor of hw that is a multiple of 128 and <= target_lanes."""
    if hw % 128 != 0:
        return hw                       # full-extent block (always legal)
    target = max(128, (target_lanes // 128) * 128)
    best = 128
    d = 128
    while d <= min(hw, target):
        if hw % d == 0:
            best = d
        d += 128
    return best


def _pick_batch_tile(b):
    # The output's second-to-last block dim must be a multiple of 8 or the
    # full extent; 8 sublanes gives dense (unmasked) stores.
    return 8 if b % 8 == 0 else b


def norm_loss(outputs, targets, *, vmem_block_budget_bytes=2 * 1024 * 1024):
    """L2 norm of (outputs - targets) over axis=1 (channel axis), NCHW inputs."""
    assert outputs.shape == targets.shape
    B, C, H, W = outputs.shape
    HW = H * W

    o = outputs.reshape(B, C, HW)
    t = targets.reshape(B, C, HW)

    TB = _pick_batch_tile(B)
    # Bytes per input block in VMEM ~= TB * pad8(C) * TILE_HW * 4 (f32).
    bytes_per_lane = TB * _round_up(C, 8) * 4
    target_lanes = max(512, vmem_block_budget_bytes // bytes_per_lane)
    TILE_HW = _pick_hw_tile(HW, target_lanes)

    grid = (B // TB, HW // TILE_HW)     # HW-tile axis innermost (contiguous HBM)

    in_spec = pl.BlockSpec((TB, C, TILE_HW), lambda bi, hi: (bi, 0, hi))
    out_spec = pl.BlockSpec((TB, TILE_HW), lambda bi, hi: (bi, hi))

    elem_bytes = jnp.dtype(outputs.dtype).itemsize
    cost = pl.CostEstimate(
        flops=3 * B * C * HW + B * HW,
        transcendentals=B * HW,                               # the sqrt
        bytes_accessed=2 * B * C * HW * elem_bytes + B * HW * 4,
    )

    out = pl.pallas_call(
        _norm_loss_kernel,
        out_shape=jax.ShapeDtypeStruct((B, HW), jnp.float32),
        grid_spec=pltpu.PrefetchScalarGridSpec(
            num_scalar_prefetch=0,
            grid=grid,
            in_specs=[in_spec, in_spec],
            out_specs=out_spec,
        ),
        compiler_params=pltpu.CompilerParams(
            dimension_semantics=("parallel", "parallel")),
        cost_estimate=cost,
    )(o, t)

    return out.reshape(B, H, W)


if __name__ == "__main__":
    key = jax.random.PRNGKey(0)
    k1, k2 = jax.random.split(key)

    B, C, H, W = 2, 4, 16, 16
    outputs = jax.random.normal(k1, (B, C, H, W), dtype=jnp.float32)
    targets = jax.random.normal(k2, (B, C, H, W), dtype=jnp.float32)

    result = norm_loss(outputs, targets)
    result = jax.block_until_ready(result)

    # Pure-JAX reference (same semantics as torch.linalg.norm(x, ord=2, axis=1)).
    ref = jnp.sqrt(jnp.sum((outputs - targets) ** 2, axis=1))
    np.testing.assert_allclose(np.asarray(result), np.asarray(ref),
                               rtol=1e-5, atol=1e-5)

    print("KERNEL_OK")
</pallas_src>

<mosaic_0001>
module attributes {stable_mosaic.version = 11 : i64} {
  func.func @_norm_loss_kernel(%arg0: i32, %arg1: i32, %arg2: memref<2x4x256xf32, #tpu.memory_space<vmem>>, %arg3: memref<2x4x256xf32, #tpu.memory_space<vmem>>, %arg4: memref<2x256xf32, #tpu.memory_space<vmem>>) attributes {dimension_semantics = [#tpu.dimension_semantics<parallel>, #tpu.dimension_semantics<parallel>], iteration_bounds = array<i64: 1, 1>, scalar_prefetch = 0 : i64, scratch_operands = 0 : i64, tpu.core_type = #tpu.core_type<tc>, window_params = [{transform_indices = @transform_0, window_bounds = array<i64: 2, 4, 256>}, {transform_indices = @transform_1, window_bounds = array<i64: 2, 4, 256>}, {transform_indices = @transform_2, window_bounds = array<i64: 2, 256>}]} {
    %c0 = arith.constant 0 : index
    %c0_0 = arith.constant 0 : index
    %c0_1 = arith.constant 0 : index
    %0 = vector.load %arg2[%c0, %c0_0, %c0_1] : memref<2x4x256xf32, #tpu.memory_space<vmem>>, vector<2x4x256xf32>
    %c0_2 = arith.constant 0 : index
    %c0_3 = arith.constant 0 : index
    %c0_4 = arith.constant 0 : index
    %1 = vector.load %arg3[%c0_2, %c0_3, %c0_4] : memref<2x4x256xf32, #tpu.memory_space<vmem>>, vector<2x4x256xf32>
    %2 = arith.subf %0, %1 : vector<2x4x256xf32>
    %3 = arith.mulf %2, %2 : vector<2x4x256xf32>
    %cst = arith.constant dense<0.000000e+00> : vector<2x256xf32>
    %4 = vector.multi_reduction <add>, %3, %cst [1] : vector<2x4x256xf32> to vector<2x256xf32>
    %5 = math.sqrt %4 : vector<2x256xf32>
    %c0_5 = arith.constant 0 : index
    %c0_6 = arith.constant 0 : index
    %6 = vector.load %arg4[%c0_5, %c0_6] : memref<2x256xf32, #tpu.memory_space<vmem>>, vector<2x256xf32>
    tpu.vector_store %arg4[%c0_5, %c0_6], %5 {strides = array<i32>} : memref<2x256xf32, #tpu.memory_space<vmem>>, vector<2x256xf32>,
    return
  }
  func.func @transform_0(%arg0: i32, %arg1: i32) -> (i32, i32, i32) {
    %c0_i32 = arith.constant 0 : i32
    %c0_i32_0 = arith.constant 0 : i32
    return %arg0, %c0_i32, %arg1 : i32, i32, i32
  }
  func.func @transform_1(%arg0: i32, %arg1: i32) -> (i32, i32, i32) {
    %c0_i32 = arith.constant 0 : i32
    %c0_i32_0 = arith.constant 0 : i32
    return %arg0, %c0_i32, %arg1 : i32, i32, i32
  }
  func.func @transform_2(%arg0: i32, %arg1: i32) -> (i32, i32) {
    %c0_i32 = arith.constant 0 : i32
    return %arg0, %arg1 : i32, i32
  }
}

</mosaic_0001>

<bundles_post_ra>
// kernel: tpu_custom_call.1
= control target key start
LH: loop header
LB: loop body
LE: loop exit
PB: predicated region body
PF: predicated region fallthrough
CT: control target
= control target key end

     0   :  { %7 = vsyncpa [#allocation3], 0  ;;  %s274_s0 = inlined_call_operand.hbm [shape: f32[2,4,256], index: 0, kind: input, shape index: {}]   ;;  %s275_s1 = inlined_call_operand.hbm [shape: f32[2,4,256], index: 1, kind: input, shape index: {}]   ;;  %s276_s2 = inlined_call_operand.hbm [shape: f32[2,256], index: 2, kind: output, shape index: {}]  }
   0x1   :  { %8 = vsyncpa [#allocation6], 0 }
   0x2   :  { %9 = vsyncpa [#allocation4], 0  ;;  %s242_s9 = smov [#allocation2]  }
   0x3   :  { %s15_s10 = sshll.u32 %s242_s9, 4  ;;  %s16_s10 = int_to_ptr.vmem [resolvable:$true] %s15_s10 }
   0x4   :  { %s184_s11 = scalar_lea.vmem %s16_s10, 256  ;;  %p189_p1 = scmp.lt.s32.totalorder %s16_s10, %s16_s10 }
   0x5   :  { %p185_p0 = scmp.ne.s32.totalorder %s16_s10, %s184_s11  ;;  %p190_p2 = scmp.lt.s32.totalorder %s184_s11, %s184_s11 }
   0x7   :  { %p191_p3 = por %p190_p2, %p189_p1 }
   0x9   :  { %p192_p4 = pnand %p191_p3, %p185_p0 }
   0xb   :  { %195 = shalt.err (!%p192_p4)
}
   0xc   :  { %s243_s12 = smov 128   ;;  %s244_s13 = smov 8  }
   0xd   :  { %21 = dma.hbm_to_vmem [thread:$0]  %s274_s0, 256, %s16_s10, [#allocation3], %s243_s12, %s243_s12, %s244_s13  }
   0xe   :  { %s245_s16 = smov [#allocation5]  }
   0xf   :  { %s27_s17 = sshll.u32 %s245_s16, 4  ;;  %s28_s17 = int_to_ptr.vmem [resolvable:$true] %s27_s17 }
  0x10   :  { %s204_s18 = scalar_lea.vmem %s28_s17, 256  ;;  %p209_p6 = scmp.lt.s32.totalorder %s28_s17, %s28_s17 }
  0x11   :  { %p205_p5 = scmp.ne.s32.totalorder %s28_s17, %s204_s18  ;;  %p210_p7 = scmp.lt.s32.totalorder %s204_s18, %s204_s18 }
  0x13   :  { %p211_p8 = por %p210_p7, %p209_p6 }
  0x15   :  { %p212_p9 = pnand %p211_p8, %p205_p5 }
  0x17   :  { %215 = shalt.err (!%p212_p9)
}
  0x18   :  { %33 = dma.hbm_to_vmem [thread:$0]  %s275_s1, 256, %s28_s17, [#allocation6], %s243_s12, %s243_s12, %s244_s13  }
  0x19   :  { %236 = dma.done.wait [#allocation3], 256  }
  0x1a   :  { %237 = vsyncadd [#allocation3], 4294967040 }
  0x1b   :  { %238 = dma.done.wait [#allocation6], 256  }
  0x1c   :  { %239 = vsyncadd [#allocation6], 4294967040  ;;  %v40_v0 = vld [vmem:[#allocation2] sm:$0xff]  ;;  %v41_v1 = vld [vmem:[#allocation2 + $0x8] sm:$0xff]  ;;  %vm54_vm0 = vcmask 1043456   ;;  %v119_v38 = vlaneseq  ;;  %vm136_vm9 = vcmask 1041409  }
  0x1d   :  { %v42_v2 = vld [vmem:[#allocation5] sm:$0xff]  ;;  %v43_v3 = vld [vmem:[#allocation5 + $0x8] sm:$0xff]  ;;  %v246_v39 = vmov 1983009808   ;;  %vm138_vm10 = vcmask 1043459   ;;  %vm140_vm11 = vcmask 1045509  }
  0x1e   :  { %v44_v4 = vsub.f32 %v40_v0, %v42_v2  ;;  %v45_v5 = vsub.f32 %v41_v1, %v43_v3  ;;  %v117_v40 = vunpack.c.l.s4 %v246_v39  ;;  %v120_v41 = vshrl.u32 %v119_v38, 7  ;;  %s247_s0 = smov [#allocation7]  }
  0x1f   :  { %s152_s1 = sshll.u32 %s247_s0, 4  ;;  %vm142_vm12 = vcmask 1047559   ;;  %s153_s1 = int_to_ptr.vmem [resolvable:$true] %s152_s1 }
  0x20   :  { %v46_v6 = vmul.f32 %v44_v4, %v44_v4  ;;  %v47_v7 = vmul.f32 %v45_v5, %v45_v5  ;;  %v118_v44 = vunpack.c.0.s8 %v117_v40  ;;  %s216_s21 = scalar_lea.vmem %s153_s1, 64  ;;  %p221_p11 = scmp.lt.s32.totalorder %s153_s1, %s153_s1 }
  0x21   :  { %p217_p10 = scmp.ne.s32.totalorder %s153_s1, %s216_s21  ;;  %p222_p12 = scmp.lt.s32.totalorder %s216_s21, %s216_s21 }
  0x22   :  { %v50_v8 = vcombine.high %v46_v6, %v46_v6  ;;  %v55_v9 = vsel %vm54_vm0, %v46_v6, 0.0  ;;  %v51_v10 = vcombine.high %v47_v7, %v47_v7  ;;  %v69_v12 = vsel %vm54_vm0, %v47_v7, 0.0 }
  0x23   :  { %v56_v11 = vrot.slane %v55_v9, 4  ;;  %v70_v14 = vrot.slane %v69_v12, 4  ;;  %v121_v62 = vsub.s32 %v118_v44, %v120_v41  ;;  %p223_p13 = por %p222_p12, %p221_p11 }
  0x24   :  { %v62_v13 = vsel %vm54_vm0, %v50_v8, 0.0  ;;  %v76_v17 = vsel %vm54_vm0, %v51_v10, 0.0 }
  0x25   :  { %v57_v15 = vadd.f32 %v56_v11, %v55_v9  ;;  %v63_v16 = vrot.slane %v62_v13, 4  ;;  %v71_v18 = vadd.f32 %v70_v14, %v69_v12  ;;  %v77_v19 = vrot.slane %v76_v17, 4  ;;  %p224_p0 = pnand %p223_p13, %p217_p10 }
  0x27   :  { %v58_v20 = vrot.slane %v57_v15, 2  ;;  %v64_v21 = vadd.f32 %v63_v16, %v62_v13  ;;  %v72_v22 = vrot.slane %v71_v18, 2  ;;  %v78_v23 = vadd.f32 %v77_v19, %v76_v17 }
  0x29   :  { %v59_v24 = vadd.f32 %v58_v20, %v57_v15  ;;  %v65_v25 = vrot.slane %v64_v21, 2  ;;  %v73_v26 = vadd.f32 %v72_v22, %v71_v18  ;;  %v79_v27 = vrot.slane %v78_v23, 2 }
  0x2b   :  { %v60_v28 = vrot.slane %v59_v24, 1  ;;  %v66_v29 = vadd.f32 %v65_v25, %v64_v21  ;;  %v74_v30 = vrot.slane %v73_v26, 1  ;;  %v80_v31 = vadd.f32 %v79_v27, %v78_v23 }
  0x2d   :  { %v61_v32 = vadd.f32 %v60_v28, %v59_v24  ;;  %v67_v33 = vrot.slane %v66_v29, 1  ;;  %v75_v34 = vadd.f32 %v74_v30, %v73_v26  ;;  %v81_v35 = vrot.slane %v80_v31, 1 }
  0x2f   :  { %v68_v36 = vadd.f32 %v67_v33, %v66_v29  ;;  %168 = vrsqrt.f32 %v61_v32  ;;  %v82_v37 = vadd.f32 %v81_v35, %v80_v31  ;;  %vm85_vm1 = vcmp.eq.f32.partialorder %v61_v32, inf }
  0x30   :  { %170 = vrsqrt.f32 %v75_v34  ;;  %vm87_vm2 = vcmp.eq.f32.partialorder %v61_v32, 0.0  ;;  %v88_v43 = vand.u32 2147483648, %v61_v32  ;;  %vm99_vm4 = vcmp.eq.f32.partialorder %v75_v34, inf }
  0x31   :  { %172 = vrsqrt.f32 %v68_v36  ;;  %vm92_vm3 = vcmp.eq.f32.partialorder %v68_v36, inf  ;;  %v102_v47 = vand.u32 2147483648, %v75_v34  ;;  %vm94_vm5 = vcmp.eq.f32.partialorder %v68_v36, 0.0 }
  0x32   :  { %174 = vrsqrt.f32 %v82_v37  ;;  %v95_v49 = vand.u32 2147483648, %v68_v36  ;;  %vm101_vm6 = vcmp.eq.f32.partialorder %v75_v34, 0.0  ;;  %vm106_vm7 = vcmp.eq.f32.partialorder %v82_v37, inf }
  0x33   :  { %v109_v54 = vand.u32 2147483648, %v82_v37  ;;  %vm108_vm8 = vcmp.eq.f32.partialorder %v82_v37, 0.0 }
  0x3c   :  { %v169_v42 = vpop.eup %168 }
  0x3d   :  { %v171_v45 = vpop.eup %170  ;;  %v84_v46 = vmul.f32 %v169_v42, %v61_v32 }
  0x3e   :  { %v173_v48 = vpop.eup %172  ;;  %v98_v50 = vmul.f32 %v171_v45, %v75_v34 }
  0x3f   :  { %v175_v51 = vpop.eup %174  ;;  %v86_v52 = vsel %vm85_vm1, %v61_v32, %v84_v46  ;;  %v91_v53 = vmul.f32 %v173_v48, %v68_v36 }
  0x40   :  { %v89_v55 = vsel %vm87_vm2, %v88_v43, %v86_v52  ;;  %v100_v56 = vsel %vm99_vm4, %v75_v34, %v98_v50  ;;  %v105_v57 = vmul.f32 %v175_v51, %v82_v37 }
  0x41   :  { %v93_v58 = vsel %vm92_vm3, %v68_v36, %v91_v53  ;;  %v103_v59 = vsel %vm101_vm6, %v102_v47, %v100_v56 }
  0x42   :  { %v96_v60 = vsel %vm94_vm5, %v95_v49, %v93_v58  ;;  %v107_v61 = vsel %vm106_vm7, %v82_v37, %v105_v57 }
  0x43   :  { %v110_v63 = vsel %vm108_vm8, %v109_v54, %v107_v61  ;;  %v115_v0 = vcombine.low %v89_v55, %v96_v60 }
  0x44   :  { %v123_v1 = vcombine.low %v103_v59, %v110_v63 }
  0x45   :  { %v122_v2 = vrot.slane %v115_v0, %v121_v62 }
  0x46   :  { %v130_v3 = vrot.slane %v123_v1, %v121_v62 }
  0x48   :  { %v135_v4 = vrot.slane %v130_v3, 7 }
  0x4a   :  { %v137_v5 = vsel %vm136_vm9, %v135_v4, %v122_v2 }
  0x4b   :  { %v139_v6 = vsel %vm138_vm10, %v135_v4, %v137_v5 }
  0x4c   :  { %v141_v7 = vsel %vm140_vm11, %v135_v4, %v139_v6 }
  0x4d   :  { %v143_v8 = vsel %vm142_vm12, %v135_v4, %v141_v7 }
  0x4e   :  { %145 = vst [vmem:[#allocation7] sm:$0xf] %v143_v8 }
  0x4f   :  { %227 = shalt.err (!%p224_p0)
}
  0x50   :  { %155 = dma.vmem_to_hbm [thread:$0]  %s153_s1, 64, %s276_s2, [#allocation4]  }
  0x51   :  { %240 = dma.done.wait [#allocation4], 64  }
  0x52   :  { %241 = vsyncadd [#allocation4], 4294967232 }
  0x53   :  { %159 = vsyncpa [#allocation3], 1 }
  0x54   :  { %160 = vsyncpa [#allocation6], 1 }
  0x55   :  { %161 = vsyncpa [#allocation4], 1 }

</bundles_post_ra>
